<compile_context>
chip_gen: v7x
topology: tpu7x:2x2x1
jax: 0.10.0
libtpu: 0.0.40
codegen_flags: <defaults>
</compile_context>

<pallas_src>
import functools
import math

import jax
import jax.numpy as jnp
from jax.experimental import pallas as pl
from jax.experimental.pallas import tpu as pltpu


# --------------------------- Pallas kernel -----------------------------------

def _time_embedding_kernel(t_ref, freq_ref, phase_ref, w1_ref, b1_ref,
                           w2_ref, b2_ref, o_ref):
    # t_ref    : (1, bm)         timesteps for this row block (lane-major)
    # freq_ref : (C//4, 1)  f32  [freq, freq]  sinusoidal frequencies
    # phase_ref: (C//4, 1)  f32  [0, pi/2]     -> sin half / cos half
    # w1_ref   : (C//4, C)  bf16 first Linear weight, (in, out) layout
    # b1_ref   : (1, C)     f32
    # w2_ref   : (C, C)     bf16 second Linear weight, (in, out) layout
    # b2_ref   : (1, C)     f32
    t_row = t_ref[...].astype(jnp.float32)                        # (1, bm)

    # Transposed PE, lane-dense: (C//4, bm).  cos(x) == sin(x + pi/2).
    arg = freq_ref[...] * t_row + phase_ref[...]                   # (C//4, bm)
    pe_t = jnp.sin(arg).astype(jnp.bfloat16)

    # First Linear:  pe @ W1  ==  dot_general(pe_t, W1) contracting dim 0 of
    # both operands (transposed-LHS form -> no XLU transpose of pe_t needed).
    h = jax.lax.dot_general(
        pe_t, w1_ref[...],
        dimension_numbers=(((0,), (0,)), ((), ())),
        preferred_element_type=jnp.float32)                        # (bm, C)
    h = h + b1_ref[...]
    h = h * jax.nn.sigmoid(h)                                      # SiLU in f32

    # Second Linear.
    y = jnp.dot(h.astype(jnp.bfloat16), w2_ref[...],
                preferred_element_type=jnp.float32)
    o_ref[...] = (y + b2_ref[...]).astype(o_ref.dtype)


# --------------------------- wrapper ------------------------------------------

def _round_up(x, m):
    return (x + m - 1) // m * m


def time_embedding(t, w1, b1, w2, b2, *, n_channels, block_m=512,
                   out_dtype=jnp.float32):
    """TimeEmbedding forward.

    t : (B,) float timesteps
    w1: (n_channels // 4, n_channels)   (in, out) layout == PyTorch W1.T
    b1: (n_channels,)
    w2: (n_channels, n_channels)        (in, out) layout == PyTorch W2.T
    b2: (n_channels,)
    returns: (B, n_channels) in out_dtype
    """
    B = t.shape[0]
    C = n_channels
    # half_dim - 1 appears in the frequency denominator -> need n_channels >= 16.
    assert C % 8 == 0 and C >= 16, "n_channels must be a multiple of 8 and >= 16"
    half_dim = C // 8
    pe_dim = C // 4
    assert w1.shape == (pe_dim, C) and w2.shape == (C, C)

    # Sinusoidal frequencies (same formula as the PyTorch forward), duplicated
    # for the fused sin/cos pass:  pe = sin(t * [f, f] + [0, pi/2]).
    freq = jnp.exp(jnp.arange(half_dim, dtype=jnp.float32)
                   * (-math.log(10000.0) / (half_dim - 1)))
    freq2 = jnp.concatenate([freq, freq]).reshape(pe_dim, 1)
    phase = jnp.concatenate(
        [jnp.zeros((half_dim,), jnp.float32),
         jnp.full((half_dim,), 0.5 * math.pi, jnp.float32)]).reshape(pe_dim, 1)

    # Pre-cast MXU weights to bf16 ONCE (halves weight DMA / VMEM residency;
    # the per-step kernel body does no re-casting of resident weights).
    w1_bf = w1.astype(jnp.bfloat16)
    w2_bf = w2.astype(jnp.bfloat16)

    # Row-block size: as big as possible to amortize per-step overhead, but keep
    # >= 2 row blocks for large batches so v7x's two TensorCores both get work.
    block_m = max(128, _round_up(block_m, 128))
    bm = _round_up(B, 8) if B <= block_m else block_m
    B_pad = _round_up(B, bm)
    if B_pad // bm < 2 and B >= 256:
        bm = _round_up((B + 1) // 2, 128)
        B_pad = _round_up(B, bm)

    # Lane-major timesteps: (1, B_pad) row, so each (1, bm) block DMA moves
    # bm * 4 bytes instead of a 128-lane-padded column.
    t_row = jnp.zeros((1, B_pad), jnp.float32).at[0, :B].set(
        t.astype(jnp.float32))

    out = pl.pallas_call(
        _time_embedding_kernel,
        out_shape=jax.ShapeDtypeStruct((B_pad, C), out_dtype),
        grid=(B_pad // bm,),
        in_specs=[
            pl.BlockSpec((1, bm), lambda i: (0, i)),          # t (lane-major)
            pl.BlockSpec((pe_dim, 1), lambda i: (0, 0)),      # freq2 (resident)
            pl.BlockSpec((pe_dim, 1), lambda i: (0, 0)),      # phase (resident)
            pl.BlockSpec((pe_dim, C), lambda i: (0, 0)),      # W1 bf16 (resident)
            pl.BlockSpec((1, C), lambda i: (0, 0)),           # b1
            pl.BlockSpec((C, C), lambda i: (0, 0)),           # W2 bf16 (resident)
            pl.BlockSpec((1, C), lambda i: (0, 0)),           # b2
        ],
        out_specs=pl.BlockSpec((bm, C), lambda i: (i, 0)),    # lane-dense stores
        compiler_params=pltpu.CompilerParams(
            dimension_semantics=("parallel",)),
    )(t_row, freq2, phase, w1_bf, b1.reshape(1, C), w2_bf, b2.reshape(1, C))
    return out[:B]


# --------------------------- test ---------------------------------------------

if __name__ == "__main__":
    key = jax.random.PRNGKey(0)
    k_t, k1, k2, k3, k4 = jax.random.split(key, 5)

    # small shapes: n_channels = 128 -> PE dim 32, lane-dense 128-wide output.
    B, C = 8, 128

    t = jax.random.randint(k_t, (B,), 0, 1000).astype(jnp.float32)
    w1 = (0.05 * jax.random.normal(k1, (C // 4, C))).astype(jnp.float32)
    b1 = (0.05 * jax.random.normal(k2, (C,))).astype(jnp.float32)
    w2 = (0.05 * jax.random.normal(k3, (C, C))).astype(jnp.float32)
    b2 = (0.05 * jax.random.normal(k4, (C,))).astype(jnp.float32)

    fwd = jax.jit(functools.partial(time_embedding, n_channels=C))
    y = jax.block_until_ready(fwd(t, w1, b1, w2, b2))

    # pure-JAX f32 reference mirroring the PyTorch forward
    def ref(t_):
        half_dim = C // 8
        freq = jnp.exp(jnp.arange(half_dim, dtype=jnp.float32)
                       * (-math.log(10000.0) / (half_dim - 1)))
        arg = t_[:, None] * freq[None, :]
        pe = jnp.concatenate([jnp.sin(arg), jnp.cos(arg)], axis=1)
        h = pe @ w1 + b1
        h = h * jax.nn.sigmoid(h)
        return h @ w2 + b2

    y_ref = ref(t)
    assert y.shape == (B, C), y.shape
    assert bool(jnp.all(jnp.isfinite(y)))
    # bf16 MXU operands with f32 accumulation -> modest tolerance vs f32 reference
    assert bool(jnp.allclose(y, y_ref, rtol=5e-2, atol=5e-3)), \
        float(jnp.max(jnp.abs(y - y_ref)))
    print("KERNEL_OK")
</pallas_src>

<mosaic_0001>
module attributes {stable_mosaic.version = 11 : i64} {
  func.func @_time_embedding_kernel(%arg0: i32, %arg1: memref<1x8xf32, #tpu.memory_space<vmem>>, %arg2: memref<32x1xf32, #tpu.memory_space<vmem>>, %arg3: memref<32x1xf32, #tpu.memory_space<vmem>>, %arg4: memref<32x128xbf16, #tpu.memory_space<vmem>>, %arg5: memref<1x128xf32, #tpu.memory_space<vmem>>, %arg6: memref<128x128xbf16, #tpu.memory_space<vmem>>, %arg7: memref<1x128xf32, #tpu.memory_space<vmem>>, %arg8: memref<8x128xf32, #tpu.memory_space<vmem>>) attributes {dimension_semantics = [#tpu.dimension_semantics<parallel>], iteration_bounds = array<i64: 1>, scalar_prefetch = 0 : i64, scratch_operands = 0 : i64, tpu.core_type = #tpu.core_type<tc>, window_params = [{transform_indices = @transform_0, window_bounds = array<i64: 1, 8>}, {pipeline_mode = #tpu.pipeline_mode<synchronous>, transform_indices = @transform_1, window_bounds = array<i64: 32, 1>}, {pipeline_mode = #tpu.pipeline_mode<synchronous>, transform_indices = @transform_2, window_bounds = array<i64: 32, 1>}, {pipeline_mode = #tpu.pipeline_mode<synchronous>, transform_indices = @transform_3, window_bounds = array<i64: 32, 128>}, {pipeline_mode = #tpu.pipeline_mode<synchronous>, transform_indices = @transform_4, window_bounds = array<i64: 1, 128>}, {pipeline_mode = #tpu.pipeline_mode<synchronous>, transform_indices = @transform_5, window_bounds = array<i64: 128, 128>}, {pipeline_mode = #tpu.pipeline_mode<synchronous>, transform_indices = @transform_6, window_bounds = array<i64: 1, 128>}, {transform_indices = @transform_7, window_bounds = array<i64: 8, 128>}]} {
    %c0 = arith.constant 0 : index
    %c0_0 = arith.constant 0 : index
    %0 = vector.load %arg1[%c0, %c0_0] : memref<1x8xf32, #tpu.memory_space<vmem>>, vector<1x8xf32>
    %c0_1 = arith.constant 0 : index
    %c0_2 = arith.constant 0 : index
    %1 = vector.load %arg2[%c0_1, %c0_2] : memref<32x1xf32, #tpu.memory_space<vmem>>, vector<32x1xf32>
    %2 = vector.broadcast %1 : vector<32x1xf32> to vector<32x8xf32>
    %3 = vector.broadcast %0 : vector<1x8xf32> to vector<32x8xf32>
    %4 = arith.mulf %2, %3 : vector<32x8xf32>
    %c0_3 = arith.constant 0 : index
    %c0_4 = arith.constant 0 : index
    %5 = vector.load %arg3[%c0_3, %c0_4] : memref<32x1xf32, #tpu.memory_space<vmem>>, vector<32x1xf32>
    %6 = vector.broadcast %5 : vector<32x1xf32> to vector<32x8xf32>
    %7 = arith.addf %4, %6 : vector<32x8xf32>
    %8 = math.sin %7 : vector<32x8xf32>
    %9 = arith.truncf %8 : vector<32x8xf32> to vector<32x8xbf16>
    %c0_5 = arith.constant 0 : index
    %c0_6 = arith.constant 0 : index
    %10 = vector.load %arg4[%c0_5, %c0_6] : memref<32x128xbf16, #tpu.memory_space<vmem>>, vector<32x128xbf16>
    %cst = arith.constant dense<0.000000e+00> : vector<8x128xf32>
    %11 = tpu.matmul %9, %10, %cst {dimension_numbers = #tpu.dot_dimension_numbers<[0], [0], [1], [1], [0, 1, 1, 1], [], []>} : vector<32x8xbf16>, vector<32x128xbf16>, vector<8x128xf32> -> vector<8x128xf32>
    %c0_7 = arith.constant 0 : index
    %c0_8 = arith.constant 0 : index
    %12 = vector.load %arg5[%c0_7, %c0_8] : memref<1x128xf32, #tpu.memory_space<vmem>>, vector<1x128xf32>
    %13 = vector.broadcast %12 : vector<1x128xf32> to vector<8x128xf32>
    %14 = arith.addf %11, %13 : vector<8x128xf32>
    %15 = arith.negf %14 : vector<8x128xf32>
    %16 = math.exp %15 : vector<8x128xf32>
    %cst_9 = arith.constant 1.000000e+00 : f32
    %17 = vector.broadcast %cst_9 : f32 to vector<8x128xf32>
    %18 = arith.addf %17, %16 : vector<8x128xf32>
    %19 = arith.divf %17, %18 : vector<8x128xf32>
    %20 = arith.mulf %14, %19 : vector<8x128xf32>
    %21 = arith.truncf %20 : vector<8x128xf32> to vector<8x128xbf16>
    %c0_10 = arith.constant 0 : index
    %c0_11 = arith.constant 0 : index
    %22 = vector.load %arg6[%c0_10, %c0_11] : memref<128x128xbf16, #tpu.memory_space<vmem>>, vector<128x128xbf16>
    %cst_12 = arith.constant dense<0.000000e+00> : vector<8x128xf32>
    %23 = tpu.matmul %21, %22, %cst_12 {dimension_numbers = #tpu.dot_dimension_numbers<[1], [0], [0], [1], [0, 0, 1, 1], [], []>} : vector<8x128xbf16>, vector<128x128xbf16>, vector<8x128xf32> -> vector<8x128xf32>
    %c0_13 = arith.constant 0 : index
    %c0_14 = arith.constant 0 : index
    %24 = vector.load %arg7[%c0_13, %c0_14] : memref<1x128xf32, #tpu.memory_space<vmem>>, vector<1x128xf32>
    %25 = vector.broadcast %24 : vector<1x128xf32> to vector<8x128xf32>
    %26 = arith.addf %23, %25 : vector<8x128xf32>
    %c0_15 = arith.constant 0 : index
    %c0_16 = arith.constant 0 : index
    %27 = vector.load %arg8[%c0_15, %c0_16] : memref<8x128xf32, #tpu.memory_space<vmem>>, vector<8x128xf32>
    tpu.vector_store %arg8[%c0_15, %c0_16], %26 {strides = array<i32>} : memref<8x128xf32, #tpu.memory_space<vmem>>, vector<8x128xf32>,
    return
  }
  func.func @transform_0(%arg0: i32) -> (i32, i32) {
    %c0_i32 = arith.constant 0 : i32
    %c0_i32_0 = arith.constant 0 : i32
    return %c0_i32, %arg0 : i32, i32
  }
  func.func @transform_1(%arg0: i32) -> (i32, i32) {
    %c0_i32 = arith.constant 0 : i32
    %c0_i32_0 = arith.constant 0 : i32
    %c0_i32_1 = arith.constant 0 : i32
    return %c0_i32, %c0_i32_0 : i32, i32
  }
  func.func @transform_2(%arg0: i32) -> (i32, i32) {
    %c0_i32 = arith.constant 0 : i32
    %c0_i32_0 = arith.constant 0 : i32
    %c0_i32_1 = arith.constant 0 : i32
    return %c0_i32, %c0_i32_0 : i32, i32
  }
  func.func @transform_3(%arg0: i32) -> (i32, i32) {
    %c0_i32 = arith.constant 0 : i32
    %c0_i32_0 = arith.constant 0 : i32
    %c0_i32_1 = arith.constant 0 : i32
    return %c0_i32, %c0_i32_0 : i32, i32
  }
  func.func @transform_4(%arg0: i32) -> (i32, i32) {
    %c0_i32 = arith.constant 0 : i32
    %c0_i32_0 = arith.constant 0 : i32
    %c0_i32_1 = arith.constant 0 : i32
    return %c0_i32, %c0_i32_0 : i32, i32
  }
  func.func @transform_5(%arg0: i32) -> (i32, i32) {
    %c0_i32 = arith.constant 0 : i32
    %c0_i32_0 = arith.constant 0 : i32
    %c0_i32_1 = arith.constant 0 : i32
    return %c0_i32, %c0_i32_0 : i32, i32
  }
  func.func @transform_6(%arg0: i32) -> (i32, i32) {
    %c0_i32 = arith.constant 0 : i32
    %c0_i32_0 = arith.constant 0 : i32
    %c0_i32_1 = arith.constant 0 : i32
    return %c0_i32, %c0_i32_0 : i32, i32
  }
  func.func @transform_7(%arg0: i32) -> (i32, i32) {
    %c0_i32 = arith.constant 0 : i32
    %c0_i32_0 = arith.constant 0 : i32
    return %arg0, %c0_i32 : i32, i32
  }
}

</mosaic_0001>

<bundles_post_ra>
// kernel: time_embedding.1
= control target key start
LH: loop header
LB: loop body
LE: loop exit
PB: predicated region body
PF: predicated region fallthrough
CT: control target
= control target key end

     0   :  { %v879_v2 = vmov 0   ;;  %s1279_s0 = inlined_call_operand.vmem [shape: f32[1,8], index: 0, kind: input, shape index: {}]   ;;  %s1280_s1 = inlined_call_operand.vmem [shape: f32[32,1], index: 1, kind: input, shape index: {}]   ;;  %s1281_s2 = inlined_call_operand.vmem [shape: f32[32,1], index: 2, kind: input, shape index: {}]   ;;  %s1282_s3 = inlined_call_operand.vmem [shape: bf16[32,128], index: 3, kind: input, shape index: {}]   ;;  %s1283_s4 = inlined_call_operand.vmem [shape: f32[1,128], index: 4, kind: input, shape index: {}]   ;;  %s1284_s5 = inlined_call_operand.vmem [shape: bf16[128,128], index: 5, kind: input, shape index: {}]   ;;  %s1285_s6 = inlined_call_operand.vmem [shape: f32[1,128], index: 6, kind: input, shape index: {}]   ;;  %s1286_s7 = inlined_call_operand.hbm [shape: f32[8,128], index: 7, kind: output, shape index: {}]  }
   0x1   :  { %v31_v0 = vld [vmem:[%s1280_s1 + $0x10] sm:$0xff]  ;;  %v29_v1 = vld [vmem:[%s1280_s1] sm:$0xff]  ;;  %824 = vset.pattern.permute.xlu1 %v879_v2  ;;  %823 = vset.pattern.permute.xlu0 %v879_v2  ;;  %v32_v3 = vld [vmem:[%s1280_s1 + $0x18] sm:$0xff] }
   0x2   :  { %45 = vperm.xlu1 %824, %v31_v0   ;;  %35 = vperm.xlu0 %823, %v29_v1   ;;  %v30_v4 = vld [vmem:[%s1280_s1 + $0x8] sm:$0xff]  ;;  %v63_v6 = vld [vmem:[%s1281_s2] sm:$0xff]  ;;  %v66_v7 = vld [vmem:[%s1281_s2 + $0x18] sm:$0xff] }
   0x3   :  { %v64_v5 = vld [vmem:[%s1281_s2 + $0x8] sm:$0xff]  ;;  %v65_v8 = vld [vmem:[%s1281_s2 + $0x10] sm:$0xff] }
   0x6   :  { %50 = vperm.xlu1 %824, %v32_v3   ;;  %40 = vperm.xlu0 %823, %v30_v4  }
   0xa   :  { %74 = vperm.xlu1 %824, %v64_v5   ;;  %69 = vperm.xlu0 %823, %v63_v6  }
   0xb   :  { %12 = vsyncpa [#allocation3], 0  ;;  %v726_v11 = vld [vmem:[%s1279_s0] ss:$0 sm:$0xff]  ;;  %v880_v55 = vmov 683565275  }
   0xc   :  { %v881_v57 = vmov 2475754826   ;;  %v882_v60 = vmov 2131351028   ;;  %v883_v62 = vmov 2102212464  }
   0xd   :  { %v884_v0 = vmov 920167782   ;;  %s888_s15 = smov [#allocation2]  }
   0xe   :  { %84 = vperm.xlu1 %824, %v66_v7   ;;  %79 = vperm.xlu0 %823, %v65_v8   ;;  %v885_v7 = vmov 1326507024  }
  0x81   :  { %v46_v9 = vpop.permute.xlu1 %45  ;;  %v36_v10 = vpop.permute.xlu0 %35 }
  0x82   :  { %v59_v14 = vmul.f32 %v726_v11, %v36_v10  ;;  %v61_v35 = vmul.f32 %v726_v11, %v46_v9 }
  0x85   :  { %v51_v12 = vpop.permute.xlu1 %50  ;;  %v41_v13 = vpop.permute.xlu0 %40 }
  0x86   :  { %v60_v15 = vmul.f32 %v726_v11, %v41_v13  ;;  %v62_v20 = vmul.f32 %v726_v11, %v51_v12 }
  0x89   :  { %v75_v16 = vpop.permute.xlu1 %74  ;;  %v70_v17 = vpop.permute.xlu0 %69 }
  0x8a   :  { %v956_v18 = vadd.f32 %v75_v16, %v60_v15  ;;  %v958_v19 = vadd.f32 %v70_v17, %v59_v14 }
  0x8c   :  { %v195_v21 = vand.u32 2147483647, %v956_v18  ;;  %v198_v22 = vand.u32 2139095040, %v956_v18  ;;  %v91_v23 = vand.u32 2147483647, %v958_v19  ;;  %v94_v24 = vand.u32 2139095040, %v958_v19 }
  0x8d   :  { %v85_v25 = vpop.permute.xlu1 %84  ;;  %v80_v38 = vpop.permute.xlu0 %79 }
  0x8e   :  { %v199_v26 = vshrl.u32 %v198_v22, 23  ;;  %v202_v27 = vand.u32 8388607, %v195_v21  ;;  %v966_v28 = vadd.f32 %v85_v25, %v62_v20  ;;  %v95_v29 = vshrl.u32 %v94_v24, 23 }
  0x8f   :  { %v98_v30 = vand.u32 8388607, %v91_v23  ;;  %v976_v45 = vadd.f32 %v80_v38, %v61_v35 }
  0x90   :  { %v731_v31 = vadd.s32 4294967169, %v199_v26  ;;  %v403_v32 = vand.u32 2147483647, %v966_v28  ;;  %v727_v33 = vadd.s32 4294967169, %v95_v29  ;;  %v406_v34 = vand.u32 2139095040, %v966_v28 }
  0x91   :  { %v203_v36 = vor.u32 8388608, %v202_v27  ;;  %v99_v39 = vor.u32 8388608, %v98_v30 }
  0x92   :  { %v205_v37 = vadd.s32 1, %v731_v31  ;;  %v101_v40 = vadd.s32 1, %v727_v33  ;;  %v407_v41 = vshrl.u32 %v406_v34, 23  ;;  %v974_v42 = vand.u32 8388607, %v403_v32 }
  0x93   :  { %v978_v48 = vshll.u32 %v203_v36, 8  ;;  %v982_v52 = vshll.u32 %v99_v39, 8 }
  0x94   :  { %vm206_vm0 = vcmp.gt.s32.totalorder %v205_v37, 0  ;;  %vm102_vm1 = vcmp.gt.s32.totalorder %v101_v40, 0  ;;  %v739_v44 = vadd.s32 4294967169, %v407_v41  ;;  %v411_v53 = vor.u32 8388608, %v974_v42 }
  0x95   :  { %v207_v43 = vsel %vm206_vm0, %v205_v37, 0  ;;  %v103_v49 = vsel %vm102_vm1, %v101_v40, 0 }
  0x96   :  { %v208_v46 = vshrl.u32 %v207_v43, 5  ;;  %v209_v47 = vand.u32 31, %v207_v43  ;;  %v980_v50 = vshrl.u32 %v103_v49, 5  ;;  %v105_v51 = vand.u32 31, %v103_v49 }
  0x97   :  { %v987_v59 = vadd.s32 1, %v739_v44 }
  0x98   :  { %v210_v54 = vsub.s32 32, %v209_v47  ;;  %v212_v56 = vshll.u32 %v880_v55, %v209_v47  ;;  %v215_v58 = vshll.u32 %v881_v57, %v209_v47  ;;  %v218_v61 = vshll.u32 %v882_v60, %v209_v47 }
  0x99   :  { %v221_v63 = vshll.u32 %v883_v62, %v209_v47  ;;  %v224_v1 = vshll.u32 %v884_v0, %v209_v47  ;;  %vm227_vm2 = vcmp.lt.s32.totalorder %v208_v46, 1  ;;  %vm228_vm3 = vcmp.lt.s32.totalorder %v208_v46, 2 }
  0x9a   :  { %v213_v2 = vshrl.u32 %v881_v57, %v210_v54  ;;  %v216_v3 = vshrl.u32 %v882_v60, %v210_v54  ;;  %v219_v4 = vshrl.u32 %v883_v62, %v210_v54  ;;  %v211_v5 = vshrl.u32 %v880_v55, %v210_v54 }
  0x9b   :  { %v222_v6 = vshrl.u32 %v884_v0, %v210_v54  ;;  %v225_v8 = vshrl.u32 %v885_v7, %v210_v54  ;;  %vm229_vm4 = vcmp.lt.s32.totalorder %v208_v46, 3  ;;  %v106_v12 = vsub.s32 32, %v105_v51 }
  0x9c   :  { %v214_v9 = vor.u32 %v213_v2, %v212_v56  ;;  %v217_v10 = vor.u32 %v216_v3, %v215_v58  ;;  %v220_v11 = vor.u32 %v219_v4, %v218_v61  ;;  %vm230_vm5 = vcmp.lt.s32.totalorder %v208_v46, 4 }
  0x9d   :  { %v223_v13 = vor.u32 %v222_v6, %v221_v63  ;;  %v226_v14 = vor.u32 %v225_v8, %v224_v1  ;;  %v108_v15 = vshll.u32 %v880_v55, %v105_v51  ;;  %v111_v27 = vshll.u32 %v881_v57, %v105_v51 }
  0x9e   :  { %v231_v16 = vsel %vm227_vm2, %v211_v5, %v214_v9  ;;  %v232_v17 = vsel %vm230_vm5, %v220_v11, 2102212464  ;;  %v235_v20 = vsel %vm227_vm2, %v214_v9, %v217_v10  ;;  %v239_v22 = vsel %vm227_vm2, %v217_v10, %v220_v11 }
  0x9f   :  { %v233_v24 = vsel %vm229_vm4, %v217_v10, %v232_v17  ;;  %v236_v25 = vsel %vm230_vm5, %v223_v13, 920167782  ;;  %v240_v26 = vsel %vm230_vm5, %v226_v14, 1326507024  ;;  %v107_v31 = vshrl.u32 %v880_v55, %v106_v12 }
  0xa0   :  { %v237_v29 = vsel %vm229_vm4, %v220_v11, %v236_v25  ;;  %v241_v30 = vsel %vm229_vm4, %v223_v13, %v240_v26  ;;  %v109_v33 = vshrl.u32 %v881_v57, %v106_v12  ;;  %v234_v34 = vsel %vm228_vm3, %v231_v16, %v233_v24 }
  0xa1   :  { %v238_v35 = vsel %vm228_vm3, %v235_v20, %v237_v29  ;;  %v242_v36 = vsel %vm228_vm3, %v239_v22, %v241_v30  ;;  %v112_v37 = vshrl.u32 %v882_v60, %v106_v12  ;;  %v114_v47 = vshll.u32 %v882_v60, %v105_v51  ;;  %v825_v29 = vld [vmem:[%s1282_s3] sm:$0xff]  }
  0xa2   :  { %v1013_v38 = vmul.u32.u64.low %v978_v48, %v242_v36  ;;  %v1014_v39 = vmul.u32.u64.high %v978_v48, %v242_v36, %v1013_v38  ;;  %v1017_v40 = vmul.u32.u64.low %v978_v48, %v238_v35  ;;  %v1018_v41 = vmul.u32.u64.high %v978_v48, %v238_v35, %v1017_v40 }
  0xa3   :  { %v110_v43 = vor.u32 %v109_v33, %v108_v15  ;;  %v113_v44 = vor.u32 %v112_v37, %v111_v27  ;;  %v115_v49 = vshrl.u32 %v883_v62, %v106_v12  ;;  %v250_v54 = vmul.u32 %v978_v48, %v234_v34 }
  0xa4   :  { %v117_v46 = vshll.u32 %v883_v62, %v105_v51  ;;  %v118_v56 = vshrl.u32 %v884_v0, %v106_v12  ;;  %v121_v58 = vshrl.u32 %v885_v7, %v106_v12  ;;  %v120_v63 = vshll.u32 %v884_v0, %v105_v51 }
  0xa5   :  { %v116_v61 = vor.u32 %v115_v49, %v114_v47  ;;  %vm123_vm6 = vcmp.lt.s32.totalorder %v980_v50, 1  ;;  %vm124_vm7 = vcmp.lt.s32.totalorder %v980_v50, 2  ;;  %vm252_vm8 = vc.u32 %v1014_v39, %v1017_v40 }
  0xa6   :  { %v253_v1 = vadd.s32 1, %v1018_v41  ;;  %v119_v2 = vor.u32 %v118_v56, %v117_v46  ;;  %vm125_vm9 = vcmp.lt.s32.totalorder %v980_v50, 3  ;;  %v122_v48 = vor.u32 %v121_v58, %v120_v63 }
  0xa7   :  { %vm126_vm10 = vcmp.lt.s32.totalorder %v980_v50, 4  ;;  %v127_v3 = vsel %vm123_vm6, %v107_v31, %v110_v43  ;;  %v131_v4 = vsel %vm123_vm6, %v110_v43, %v113_v44  ;;  %v135_v8 = vsel %vm123_vm6, %v113_v44, %v116_v61 }
  0xa8   :  { %v254_v5 = vsel %vm252_vm8, %v253_v1, %v1018_v41  ;;  %v128_v6 = vsel %vm126_vm10, %v116_v61, 2102212464  ;;  %v132_v51 = vsel %vm126_vm10, %v119_v2, 920167782  ;;  %v136_v12 = vsel %vm126_vm10, %v122_v48, 1326507024 }
  0xa9   :  { %v255_v9 = vadd.s32 %v254_v5, %v250_v54  ;;  %v129_v10 = vsel %vm125_vm9, %v113_v44, %v128_v6  ;;  %v133_v11 = vsel %vm125_vm9, %v116_v61, %v132_v51  ;;  %v137_v14 = vsel %vm125_vm9, %v119_v2, %v136_v12 }
  0xaa   :  { %v134_v13 = vsel %vm124_vm7, %v131_v4, %v133_v11  ;;  %vm414_vm11 = vcmp.gt.s32.totalorder %v987_v59, 0  ;;  %v302_v15 = vand.u32 2139095040, %v976_v45  ;;  %v138_v17 = vsel %vm124_vm7, %v135_v8, %v137_v14 }
  0xab   :  { %v256_v16 = vadd.s32 536870912, %v255_v9  ;;  %v1041_v20 = vmul.u32.u64.low %v982_v52, %v134_v13  ;;  %v1042_v22 = vmul.u32.u64.high %v982_v52, %v134_v13, %v1041_v20  ;;  %v130_v24 = vsel %vm124_vm7, %v127_v3, %v129_v10 }
  0xac   :  { %v1048_v25 = vmul.u32.u64.low %v982_v52, %v138_v17  ;;  %v1049_v26 = vmul.u32.u64.high %v982_v52, %v138_v17, %v1048_v25  ;;  %v415_v27 = vsel %vm414_vm11, %v987_v59, 0  ;;  %v299_v33 = vand.u32 2147483647, %v976_v45 }
  0xad   :  { %v1055_v30 = vshrl.u32 %v256_v16, 30  ;;  %v417_v31 = vand.u32 31, %v415_v27  ;;  %v1059_v34 = vadd.s32 %v1017_v40, %v1014_v39  ;;  %v1063_v50 = vshll.u32 %v411_v53, 8 }
  0xae   :  { %v303_v35 = vshrl.u32 %v302_v15, 23  ;;  %v146_v59 = vmul.u32 %v982_v52, %v130_v24  ;;  %v149_v37 = vadd.s32 1, %v1042_v22  ;;  %v886_v41 = vmov 0.0   ;;  %v826_v52 = vld [vmem:[%s1282_s3 + $0x8] sm:$0xff]  }
  0xaf   :  { %v258_v36 = vshll.u32 %v1055_v30, 30  ;;  %v418_v38 = vsub.s32 32, %v417_v31  ;;  %769 = vmatprep.subr.bf16.mxu0 %v886_v41  ;;  %777 = vmatprep.subr.bf16.mxu1 %v886_v41  ;;  %vm148_vm12 = vc.u32 %v1049_v26, %v1041_v20  ;;  %v416_v39 = vshrl.u32 %v415_v27, 5 }
  0xb0   :  { %v420_v42 = vshll.u32 %v880_v55, %v417_v31  ;;  %v423_v53 = vshll.u32 %v881_v57, %v417_v31  ;;  %770 = vmatpush3.bf16.msra.mxu0 %v825_v29  ;;  %v150_v43 = vsel %vm148_vm12, %v149_v37, %v1042_v22  ;;  %v426_v47 = vshll.u32 %v882_v60, %v417_v31 }
  0xb1   :  { %v1077_v40 = vsub.s32 %v255_v9, %v258_v36  ;;  %v421_v44 = vshrl.u32 %v881_v57, %v418_v38  ;;  %771 = vmatprep.subr.bf16.mxu0 %v886_v41  ;;  %v151_v49 = vadd.s32 %v150_v43, %v146_v59  ;;  %v424_v54 = vshrl.u32 %v882_v60, %v418_v38 }
  0xb2   :  { %v427_v46 = vshrl.u32 %v883_v62, %v418_v38  ;;  %v429_v56 = vshll.u32 %v883_v62, %v417_v31  ;;  %v430_v63 = vshrl.u32 %v884_v0, %v418_v38  ;;  %v432_v1 = vshll.u32 %v884_v0, %v417_v31 }
  0xb3   :  { %v261_v58 = vsub.s32 0, %v1077_v40  ;;  %v422_v61 = vor.u32 %v421_v44, %v420_v42  ;;  %v152_v2 = vadd.s32 536870912, %v151_v49  ;;  %v425_v48 = vor.u32 %v424_v54, %v423_v53 }
  0xb4   :  { %v428_v3 = vor.u32 %v427_v46, %v426_v47  ;;  %v433_v4 = vshrl.u32 %v885_v7, %v418_v38  ;;  %772 = vmatpush3.bf16.msra.mxu0 %v826_v52  ;;  %v419_v6 = vshrl.u32 %v880_v55, %v418_v38  ;;  %v431_v51 = vor.u32 %v430_v63, %v429_v56 }
  0xb5   :  { %v732_v5 = vmin.u32 %v261_v58, %v1077_v40  ;;  %v735_v8 = vadd.s32 4294967169, %v303_v35  ;;  %v1092_v9 = vshrl.u32 %v152_v2, 30  ;;  %vm435_vm13 = vcmp.lt.s32.totalorder %v416_v39, 1 }
  0xb6   :  { %v434_v10 = vor.u32 %v433_v4, %v432_v1  ;;  %vm438_vm14 = vcmp.lt.s32.totalorder %v416_v39, 4  ;;  %vm436_vm15 = vcmp.lt.s32.totalorder %v416_v39, 2  ;;  %v443_v13 = vsel %vm435_vm13, %v422_v61, %v425_v48 }
  0xb7   :  { %v263_v11 = vclz %v732_v5  ;;  %v440_v12 = vsel %vm438_vm14, %v428_v3, 2102212464  ;;  %v154_v14 = vshll.u32 %v1092_v9, 30  ;;  %vm437_vm0 = vcmp.lt.s32.totalorder %v416_v39, 3 }
  0xb8   :  { %v444_v15 = vsel %vm438_vm14, %v431_v51, 920167782  ;;  %v447_v16 = vsel %vm435_vm13, %v425_v48, %v428_v3  ;;  %v439_v22 = vsel %vm435_vm13, %v419_v6, %v422_v61  ;;  %v448_v25 = vsel %vm438_vm14, %v434_v10, 1326507024 }
  0xb9   :  { %v733_v17 = vadd.s32 4294967294, %v263_v11  ;;  %v445_v24 = vsel %vm437_vm0, %v428_v3, %v444_v15  ;;  %v155_v27 = vsub.s32 %v151_v49, %v154_v14  ;;  %v441_v29 = vsel %vm437_vm0, %v425_v48, %v440_v12 }
  0xba   :  { %v446_v31 = vsel %vm436_vm15, %v443_v13, %v445_v24  ;;  %v449_v35 = vsel %vm437_vm0, %v431_v51, %v448_v25  ;;  %v442_v47 = vsel %vm436_vm15, %v439_v22, %v441_v29  ;;  %v309_v49 = vadd.s32 1, %v735_v8 }
  0xbb   :  { %vm734_vm1 = vcmp.lt.s32.totalorder %v733_v17, 0  ;;  %v450_v36 = vsel %vm436_vm15, %v447_v16, %v449_v35  ;;  %v1098_v59 = vmul.u32.u64.low %v1063_v50, %v446_v31  ;;  %v1099_v37 = vmul.u32.u64.high %v1063_v50, %v446_v31, %v1098_v59 }
  0xbc   :  { %v266_v38 = vsel %vm734_vm1, 0, %v733_v17  ;;  %v157_v42 = vsub.s32 0, %v155_v27  ;;  %v1103_v53 = vmul.u32.u64.low %v1063_v50, %v450_v36  ;;  %v1104_v52 = vmul.u32.u64.high %v1063_v50, %v450_v36, %v1103_v53 }
  0xbd   :  { %v267_v43 = vsub.s32 32, %v266_v38  ;;  %v271_v44 = vsub.s32 4294967266, %v266_v38  ;;  %v268_v54 = vshll.u32 %v1077_v40, %v266_v38  ;;  %v306_v56 = vand.u32 8388607, %v299_v33 }
  0xbe   :  { %v728_v46 = vmin.u32 %v157_v42, %v155_v27  ;;  %v461_v63 = vadd.s32 1, %v1099_v37  ;;  %vm310_vm2 = vcmp.gt.s32.totalorder %v309_v49, 0  ;;  %v458_v2 = vmul.u32 %v1063_v50, %v442_v47 }
  0xbf   :  { %v269_v58 = vshrl.u32 %v1059_v34, %v267_v43  ;;  %v272_v61 = vadd.s32 127, %v271_v44  ;;  %vm460_vm3 = vc.u32 %v1104_v52, %v1098_v59  ;;  %v311_v39 = vsel %vm310_vm2, %v309_v49, 0 }
  0xc0   :  { %v159_v1 = vclz %v728_v46  ;;  %v462_v40 = vsel %vm460_vm3, %v461_v63, %v1099_v37  ;;  %v307_v6 = vor.u32 8388608, %v306_v56  ;;  %v313_v51 = vand.u32 31, %v311_v39 }
  0xc1   :  { %v270_v48 = vor.u32 %v269_v58, %v268_v54  ;;  %v273_v3 = vshll.u32 %v272_v61, 23  ;;  %v463_v5 = vadd.s32 %v462_v40, %v458_v2  ;;  %vm197_vm4 = vcmp.lt.s32.totalorder %v956_v18, 0 }
  0xc2   :  { %v729_v4 = vadd.s32 4294967294, %v159_v1  ;;  %vm1119_vm5 = vcmp.le.f32.partialorder %v195_v21, 0.7853982  ;;  %v314_v10 = vsub.s32 32, %v313_v51  ;;  %v147_v13 = vadd.s32 %v1041_v20, %v1049_v26 }
  0xc3   :  { %v274_v34 = vor.u32 4788187, %v273_v3  ;;  %v464_v50 = vadd.s32 536870912, %v463_v5  ;;  %v277_v12 = vcvt.s32.f32 %v270_v48  ;;  %v1127_v22 = vshll.u32 %v307_v6, 8 }
  0xc4   :  { %vm730_vm6 = vcmp.lt.s32.totalorder %v729_v4, 0  ;;  %v317_v21 = vshrl.u32 %v881_v57, %v314_v10  ;;  %v320_v25 = vshrl.u32 %v882_v60, %v314_v10  ;;  %v177_v29 = vsub.s32 4, %v1092_v9 }
  0xc5   :  { %v275_v11 = vand.u32 2147483647, %v274_v34  ;;  %v162_v14 = vsel %vm730_vm6, 0, %v729_v4  ;;  %v1125_v17 = vshrl.u32 %v464_v50, 30  ;;  %v316_v26 = vshll.u32 %v880_v55, %v313_v51 }
  0xc6   :  { %v163_v15 = vsub.s32 32, %v162_v14  ;;  %v167_v16 = vsub.s32 4294967266, %v162_v14  ;;  %v164_v31 = vshll.u32 %v155_v27, %v162_v14  ;;  %v319_v38 = vshll.u32 %v881_v57, %v313_v51 }
  0xc7   :  { %v278_v24 = vmul.f32 %v277_v12, %v275_v11  ;;  %v466_v37 = vshll.u32 %v1125_v17, 30  ;;  %v323_v42 = vshrl.u32 %v883_v62, %v314_v10  ;;  %vm93_vm7 = vcmp.lt.s32.totalorder %v958_v19, 0 }
  0xc8   :  { %v165_v35 = vshrl.u32 %v147_v13, %v163_v15  ;;  %v168_v36 = vadd.s32 127, %v167_v16  ;;  %v322_v47 = vshll.u32 %v882_v60, %v313_v51  ;;  %v312_v49 = vshrl.u32 %v311_v39, 5 }
  0xc9   :  { %v279_v20 = vxor.u32 2147483648, %v278_v24  ;;  %v1137_v44 = vsub.s32 %v463_v5, %v466_v37  ;;  %v318_v54 = vor.u32 %v317_v21, %v316_v26  ;;  %v321_v46 = vor.u32 %v320_v25, %v319_v38 }
  0xca   :  { %v166_v53 = vor.u32 %v165_v35, %v164_v31  ;;  %v169_v43 = vshll.u32 %v168_v36, 23  ;;  %vm1147_vm8 = vcmp.le.f32.partialorder %v91_v23, 0.7853982  ;;  %v324_v60 = vor.u32 %v323_v42, %v322_v47 }
  0xcb   :  { %v280_v27 = vsel %vm197_vm4, %v279_v20, %v278_v24  ;;  %v469_v61 = vsub.s32 0, %v1137_v44  ;;  %v325_v1 = vshll.u32 %v883_v62, %v313_v51  ;;  %v326_v2 = vshrl.u32 %v884_v0, %v314_v10 }
  0xcc   :  { %v283_v57 = vsel %vm1119_vm5, %v956_v18, %v280_v27  ;;  %v170_v58 = vor.u32 4788187, %v169_v43  ;;  %v173_v63 = vcvt.s32.f32 %v166_v53  ;;  %v328_v39 = vshll.u32 %v884_v0, %v313_v51 }
  0xcd   :  { %835 = vsinq.f32 %v283_v57  ;;  %v740_v3 = vmin.u32 %v469_v61, %v1137_v44  ;;  %v329_v23 = vshrl.u32 %v885_v7, %v314_v10  ;;  %v327_v40 = vor.u32 %v326_v2, %v325_v1 }
  0xce   :  { %v171_v48 = vand.u32 2147483647, %v170_v58  ;;  %837 = vcosq.f32 %v283_v57  ;;  %vm331_vm9 = vcmp.lt.s32.totalorder %v312_v49, 1  ;;  %v281_v4 = vsub.s32 4, %v1055_v30 }
  0xcf   :  { %v471_v6 = vclz %v740_v3  ;;  %v330_v34 = vor.u32 %v329_v23, %v328_v39  ;;  %vm334_vm10 = vcmp.lt.s32.totalorder %v312_v49, 4  ;;  %v315_v62 = vshrl.u32 %v880_v55, %v314_v10 }
  0xd0   :  { %v174_v5 = vmul.f32 %v173_v63, %v171_v48  ;;  %vm333_vm11 = vcmp.lt.s32.totalorder %v312_v49, 3  ;;  %v339_v0 = vsel %vm331_vm9, %v318_v54, %v321_v46  ;;  %v340_v51 = vsel %vm334_vm10, %v327_v40, 920167782 }
  0xd1   :  { %v741_v11 = vadd.s32 4294967294, %v471_v6  ;;  %v341_v12 = vsel %vm333_vm11, %v324_v60, %v340_v51  ;;  %v343_v7 = vsel %vm331_vm9, %v321_v46, %v324_v60  ;;  %vm332_vm12 = vcmp.lt.s32.totalorder %v312_v49, 2 }
  0xd2   :  { %v175_v50 = vxor.u32 2147483648, %v174_v5  ;;  %v336_v13 = vsel %vm334_vm10, %v324_v60, 2102212464  ;;  %v344_v14 = vsel %vm334_vm10, %v330_v34, 1326507024  ;;  %v178_v15 = vsel %vm93_vm7, %v177_v29, %v1092_v9 }
  0xd3   :  { %vm742_vm13 = vcmp.lt.s32.totalorder %v741_v11, 0  ;;  %v335_v10 = vsel %vm331_vm9, %v315_v62, %v318_v54  ;;  %v345_v16 = vsel %vm333_vm11, %v327_v40, %v344_v14  ;;  %v342_v25 = vsel %vm332_vm12, %v339_v0, %v341_v12 }
  0xd4   :  { %v176_v55 = vsel %vm93_vm7, %v175_v50, %v174_v5  ;;  %v474_v21 = vsel %vm742_vm13, 0, %v741_v11  ;;  %v346_v31 = vsel %vm332_vm12, %v343_v7, %v345_v16  ;;  %v337_v9 = vsel %vm333_vm11, %v321_v46, %v336_v13 }
  0xd5   :  { %v179_v24 = vsel %vm1147_vm8, %v958_v19, %v176_v55  ;;  %v180_v29 = vsel %vm1147_vm8, 0, %v178_v15  ;;  %v282_v35 = vsel %vm197_vm4, %v281_v4, %v1055_v30  ;;  %v479_v36 = vsub.s32 4294967266, %v474_v21 }
  0xd6   :  { %839 = vcosq.f32 %v179_v24  ;;  %v1181_v37 = vmul.u32.u64.low %v1127_v22, %v346_v31  ;;  %v1182_v20 = vmul.u32.u64.high %v1127_v22, %v346_v31, %v1181_v37  ;;  %v284_v43 = vsel %vm1119_vm5, 0, %v282_v35 }
  0xd7   :  { %841 = vsinq.f32 %v179_v24  ;;  %v836_v26 = vpop.eup %835  ;;  %v1185_v38 = vmul.u32.u64.low %v1127_v22, %v342_v25  ;;  %v1186_v42 = vmul.u32.u64.high %v1127_v22, %v342_v25, %v1185_v38  ;;  %v338_v47 = vsel %vm332_vm12, %v335_v10, %v337_v9 }
  0xd8   :  { %v838_v53 = vpop.eup %837  ;;  %v184_v27 = vadd.s32 3, %v180_v29  ;;  %v288_v30 = vadd.s32 3, %v284_v43  ;;  %v480_v54 = vadd.s32 127, %v479_v36  ;;  %v292_v46 = vxor.u32 2147483648, %v836_v26 }
  0xd9   :  { %vm356_vm14 = vc.u32 %v1182_v20, %v1185_v38  ;;  %v357_v57 = vadd.s32 1, %v1186_v42  ;;  %v295_v58 = vxor.u32 2147483648, %v838_v53  ;;  %v475_v61 = vsub.s32 32, %v474_v21 }
  0xda   :  { %v289_v56 = vand.u32 3, %v288_v30  ;;  %v354_v60 = vmul.u32 %v1127_v22, %v338_v47  ;;  %v459_v8 = vadd.s32 %v1098_v59, %v1104_v52  ;;  %v185_v63 = vand.u32 3, %v184_v27 }
  0xdb   :  { %v358_v49 = vsel %vm356_vm14, %v357_v57, %v1186_v42  ;;  %vm887_vm0 = vmmov 0   ;;  %v481_v1 = vshll.u32 %v480_v54, 23  ;;  %v476_v4 = vshll.u32 %v1137_v44, %v474_v21 }
  0xdc   :  { %vm291_vm15 = vcmp.eq.s32.totalorder %v289_v56, 0  ;;  %773 = vmatprep.mubr.msk.bf16.mxu0 %vm887_vm0, %v886_v41  ;;  %793 = vmatprep.mubr.msk.bf16.mxu1 %vm887_vm0, %v886_v41  ;;  %v359_v2 = vadd.s32 %v358_v49, %v354_v60  ;;  %vm294_vm1 = vcmp.eq.s32.totalorder %v289_v56, 2  ;;  %vm290_vm2 = vcmp.lt.s32.totalorder %v289_v56, 2 }
  0xdd   :  { %v293_v39 = vsel %vm291_vm15, %v838_v53, %v292_v46  ;;  %v296_v3 = vsel %vm294_vm1, %v295_v58, %v836_v26  ;;  %v477_v23 = vshrl.u32 %v459_v8, %v475_v61  ;;  %vm190_vm3 = vcmp.eq.s32.totalorder %v185_v63, 2 }
  0xde   :  { %v360_v40 = vadd.s32 536870912, %v359_v2  ;;  %v297_v52 = vsel %vm290_vm2, %v293_v39, %v296_v3  ;;  %vm287_vm4 = vweird.f32 %v956_v18  ;;  %v482_v6 = vor.u32 4788187, %v481_v1 }
  0xdf   :  { %vm187_vm5 = vcmp.eq.s32.totalorder %v185_v63, 0  ;;  %vm186_vm6 = vcmp.lt.s32.totalorder %v185_v63, 2  ;;  %v298_v51 = vsel %vm287_vm4, nan, %v297_v52  ;;  %v478_v50 = vor.u32 %v477_v23, %v476_v4 }
  0xe0   :  { %v840_v48 = vpop.eup %839  ;;  %v361_v34 = vshrl.u32 %v360_v40, 30  ;;  %vm183_vm7 = vweird.f32 %v958_v19  ;;  %v483_v13 = vand.u32 2147483647, %v482_v6  ;;  %vm405_vm9 = vcmp.lt.s32.totalorder %v966_v28, 0 }
  0xe1   :  { %v842_v22 = vpop.eup %841  ;;  %v191_v59 = vxor.u32 2147483648, %v840_v48  ;;  %v485_v15 = vcvt.s32.f32 %v478_v50  ;;  %v355_v31 = vadd.s32 %v1185_v38, %v1182_v20  ;;  %vm1211_vm10 = vcmp.le.f32.partialorder %v403_v32, 0.7853982  ;;  %v827_v50 = vld [vmem:[%s1284_s5] sm:$0xff]  }
  0xe2   :  { %v188_v5 = vxor.u32 2147483648, %v842_v22  ;;  %v362_v11 = vshll.u32 %v361_v34, 30  ;;  %v489_v47 = vsub.s32 4, %v1125_v17  ;;  %v385_v54 = vsub.s32 4, %v361_v34  ;;  %778 = vmatpush3.bf16.msra.mxu1 %v827_v50 }
  0xe3   :  { %v192_v62 = vsel %vm190_vm3, %v191_v59, %v842_v22  ;;  %v486_v18 = vmul.f32 %v485_v15, %v483_v13  ;;  %vm301_vm11 = vcmp.lt.s32.totalorder %v976_v45, 0  ;;  %vm300_vm12 = vcmp.le.f32.partialorder %v299_v33, 0.7853982  ;;  %779 = vmatprep.subr.bf16.mxu1 %v886_v41  ;;  %v833_v13 = vld [vmem:[%s1284_s5 + $0x30] sm:$0xff]  }
  0xe4   :  { %v189_v0 = vsel %vm187_vm5, %v840_v48, %v188_v5  ;;  %v363_v14 = vsub.s32 %v359_v2, %v362_v11  ;;  %v490_v32 = vsel %vm405_vm9, %v489_v47, %v1125_v17  ;;  %v386_v58 = vsel %vm301_vm11, %v385_v54, %v361_v34  ;;  %v830_v11 = vld [vmem:[%s1284_s5 + $0x18] sm:$0xff]  }
  0xe5   :  { %v193_v12 = vsel %vm186_vm6, %v189_v0, %v192_v62  ;;  %v487_v24 = vxor.u32 2147483648, %v486_v18  ;;  %v492_v46 = vsel %vm1211_vm10, 0, %v490_v32  ;;  %v388_v17 = vsel %vm300_vm12, 0, %v386_v58 }
  0xe6   :  { %v194_v7 = vsel %vm183_vm7, nan, %v193_v12  ;;  %v365_v55 = vsub.s32 0, %v363_v14  ;;  %v496_v61 = vadd.s32 3, %v492_v46  ;;  %v392_v1 = vadd.s32 3, %v388_v17  ;;  %v831_v12 = vld [vmem:[%s1284_s5 + $0x20] sm:$0xff]  }
  0xe7   :  { %v507_v44 = vpack.c.bf16 %v298_v51, %v194_v7  ;;  %v488_v19 = vsel %vm405_vm9, %v487_v24, %v486_v18  ;;  %vm495_vm2 = vweird.f32 %v966_v28  ;;  %vm391_vm4 = vweird.f32 %v976_v45  ;;  %v832_v7 = vld [vmem:[%s1284_s5 + $0x28] sm:$0xff]  }
  0xe8   :  { %v736_v10 = vmin.u32 %v365_v55, %v363_v14  ;;  %v491_v42 = vsel %vm1211_vm10, %v966_v28, %v488_v19  ;;  %v497_v63 = vand.u32 3, %v496_v61  ;;  %v393_v48 = vand.u32 3, %v392_v1  ;;  %v828_v28 = vld [vmem:[%s1284_s5 + $0x8] sm:$0xff]  }
  0xe9   :  { %520 = vxpose.xlu0.c.b16.start [1/2] (short) (narrow) %v507_v44, 16  ;;  %843 = vcosq.f32 %v491_v42  ;;  %vm548_vm5 = vcmask 261120   ;;  %780 = vmatpush3.bf16.msra.mxu1 %v828_v28  ;;  %v743_v44 = vld [vmem:[%s1283_s4] ss:$0 sm:$0xff]  ;;  %s718_s4 = sshll.u32 %s888_s15, 4  ;;  %s719_s4 = int_to_ptr.vmem [resolvable:$true] %s718_s4 }
  0xea   :  { %v367_v16 = vclz %v736_v10  ;;  %845 = vsinq.f32 %v491_v42  ;;  %vm499_vm13 = vcmp.eq.s32.totalorder %v497_v63, 0  ;;  %vm502_vm14 = vcmp.eq.s32.totalorder %v497_v63, 2  ;;  %781 = vmatprep.subr.bf16.mxu1 %v886_v41  ;;  %s855_s16 = scalar_lea.vmem %s719_s4, 128  ;;  %p860_p1 = scmp.lt.s32.totalorder %s719_s4, %s719_s4 }
  0xeb   :  { %vm498_vm15 = vcmp.lt.s32.totalorder %v497_v63, 2  ;;  %vm398_vm0 = vcmp.eq.s32.totalorder %v393_v48, 2  ;;  %vm395_vm1 = vcmp.eq.s32.totalorder %v393_v48, 0  ;;  %vm394_vm3 = vcmp.lt.s32.totalorder %v393_v48, 2  ;;  %p856_p0 = scmp.ne.s32.totalorder %s719_s4, %s855_s16  ;;  %p861_p2 = scmp.lt.s32.totalorder %s855_s16, %s855_s16 }
  0xec   :  { %v737_v21 = vadd.s32 4294967294, %v367_v16 }
  0xed   :  { %p862_p3 = por %p861_p2, %p860_p1 }
  0xee   :  { %vm738_vm8 = vcmp.lt.s32.totalorder %v737_v21, 0 }
  0xef   :  { %v370_v25 = vsel %vm738_vm8, 0, %v737_v21  ;;  %p863_p4 = pnand %p862_p3, %p856_p0 }
  0xf0   :  { %v371_v9 = vsub.s32 32, %v370_v25  ;;  %v375_v29 = vsub.s32 4294967266, %v370_v25  ;;  %v372_v36 = vshll.u32 %v363_v14, %v370_v25  ;;  %v834_v14 = vld [vmem:[%s1284_s5 + $0x38] sm:$0xff]  }
  0xf2   :  { %v373_v37 = vshrl.u32 %v355_v31, %v371_v9  ;;  %v376_v26 = vadd.s32 127, %v375_v29  ;;  %v748_v9 = vld [vmem:[%s1285_s6] ss:$0 sm:$0xff] }
  0xf3   :  { %v844_v8 = vpop.eup %843 }
  0xf4   :  { %v374_v53 = vor.u32 %v373_v37, %v372_v36  ;;  %v377_v43 = vshll.u32 %v376_v26, 23  ;;  %v846_v49 = vpop.eup %845  ;;  %v503_v39 = vxor.u32 2147483648, %v844_v8 }
  0xf5   :  { %v500_v2 = vxor.u32 2147483648, %v846_v49 }
  0xf6   :  { %v378_v20 = vor.u32 4788187, %v377_v43  ;;  %v381_v27 = vcvt.s32.f32 %v374_v53  ;;  %v504_v22 = vsel %vm502_vm14, %v503_v39, %v846_v49 }
  0xf7   :  { %v501_v3 = vsel %vm499_vm13, %v844_v8, %v500_v2 }
  0xf8   :  { %v379_v38 = vand.u32 2147483647, %v378_v20  ;;  %v505_v59 = vsel %vm498_vm15, %v501_v3, %v504_v22 }
  0xf9   :  { %v506_v6 = vsel %vm495_vm2, nan, %v505_v59 }
  0xfa   :  { %v382_v30 = vmul.f32 %v381_v27, %v379_v38 }
  0xfc   :  { %v383_v57 = vxor.u32 2147483648, %v382_v30 }
  0xfe   :  { %v384_v56 = vsel %vm301_vm11, %v383_v57, %v382_v30 }
  0xff   :  { %v387_v60 = vsel %vm300_vm12, %v976_v45, %v384_v56  ;;  %v829_v45 = vld [vmem:[%s1284_s5 + $0x10] sm:$0xff]  }
 0x100   :  { %847 = vcosq.f32 %v387_v60  ;;  %782 = vmatpush3.bf16.msra.mxu1 %v829_v45 }
 0x101   :  { %849 = vsinq.f32 %v387_v60  ;;  %783 = vmatprep.subr.bf16.mxu1 %v886_v41 }
 0x104   :  { %784 = vmatpush3.bf16.msra.mxu1 %v830_v11 }
 0x105   :  { %785 = vmatprep.subr.bf16.mxu1 %v886_v41 }
 0x108   :  { %786 = vmatpush3.bf16.msra.mxu1 %v831_v12 }
 0x109   :  { %787 = vmatprep.subr.bf16.mxu1 %v886_v41 }
 0x10a   :  { %v848_v33 = vpop.eup %847 }
 0x10b   :  { %v850_v23 = vpop.eup %849  ;;  %v399_v40 = vxor.u32 2147483648, %v848_v33 }
 0x10c   :  { %v396_v52 = vxor.u32 2147483648, %v850_v23  ;;  %788 = vmatpush3.bf16.msra.mxu1 %v832_v7 }
 0x10d   :  { %v400_v4 = vsel %vm398_vm0, %v399_v40, %v850_v23  ;;  %789 = vmatprep.subr.bf16.mxu1 %v886_v41 }
 0x10e   :  { %v397_v5 = vsel %vm395_vm1, %v848_v33, %v396_v52 }
 0x10f   :  { %v401_v34 = vsel %vm394_vm3, %v397_v5, %v400_v4 }
 0x110   :  { %v402_v62 = vsel %vm391_vm4, nan, %v401_v34  ;;  %790 = vmatpush3.bf16.msra.mxu1 %v833_v13 }
 0x111   :  { %v508_v0 = vpack.c.bf16 %v506_v6, %v402_v62  ;;  %791 = vmatprep.subr.bf16.mxu1 %v886_v41 }
 0x113   :  { %521 = vxpose.xlu0.c.b16.end [2/2] (short) (narrow) %v508_v0, 16 }
 0x114   :  { %792 = vmatpush3.bf16.msra.mxu1 %v834_v14 }
 0x175   :  { %v528_v51 = vpop.trf.xlu0 }
 0x176   :  { %774 = vmatmul.mubr.msk.bf16.vlgmr.msra.gmra.mrb[0].mxu0 %vm548_vm5, %v528_v51 }
 0x249   :  { %v586_v15 = vpop.f32.mrb[0].mxu0 }
 0x24a   :  { %v587_v55 = vadd.f32 %v743_v44, %v586_v15  ;;  %v775_v18 = vpop.f32.mrb[1].mxu0 }
 0x24b   :  { %v589_v10 = vpop.f32.mrb[2].mxu0 }
 0x24c   :  { %v747_v16 = vmul.f32 -1.442695, %v587_v55  ;;  %v776_v24 = vpop.f32.mrb[3].mxu0 }
 0x24e   :  { %851 = vpow2.f32 %v747_v16 }
 0x258   :  { %v852_v21 = vpop.eup %851 }
 0x259   :  { %v595_v25 = vadd.f32 1.0, %v852_v21 }
 0x25b   :  { %853 = vrcp.f32 %v595_v25 }
 0x265   :  { %v854_v41 = vpop.eup %853 }
 0x266   :  { %v598_v19 = vmul.f32 %v854_v41, %v587_v55 }
 0x268   :  { %v599_v31 = vpack.c.bf16 %v598_v19, %v598_v19 }
 0x26a   :  { %794 = vmatmul.mubr.bf16.vlgmr.msra.gmra.mrb[0].mxu1 %v599_v31 }
 0x33d   :  { %v705_v29 = vpop.f32.mrb[0].mxu1 }
 0x33e   :  { %v706_v35 = vadd.f32 %v748_v9, %v705_v29  ;;  %v795_v36 = vpop.f32.mrb[1].mxu1 }
 0x33f   :  { %v708_v37 = vpop.f32.mrb[2].mxu1 }
 0x340   :  { %711 = vst [vmem:[#allocation2] sm:$0xff] %v706_v35  ;;  %v796_v26 = vpop.f32.mrb[3].mxu1 }
 0x341   :  { %866 = shalt.err (!%p863_p4)
}
 0x342   :  { %s867_s6 = scalar_lea.hbm %s1286_s7, 128 }
 0x343   :  { %p868_p5 = scmp.ne.s32.totalorder %s1286_s7, %s867_s6  ;;  %p871_p6 = scmp.lt.u32.totalorder %s867_s6, %s1286_s7 }
 0x345   :  { %p873_p7 = pnand %p871_p6, %p868_p5 }
 0x347   :  { %876 = shalt.err (!%p873_p7)
}
 0x348   :  { %721 = dma.vmem_to_hbm [thread:$0]  %s719_s4, 128, %s1286_s7, [#allocation3]  }
 0x349   :  { %877 = dma.done.wait [#allocation3], 128  }
 0x34a   :  { %878 = vsyncadd [#allocation3], 4294967168 }
 0x34b   :  { %725 = vsyncpa [#allocation3], 1 }

</bundles_post_ra>
